<compile_context>
chip_gen: v7x
topology: tpu7x:2x2x1
jax: 0.10.0
libtpu: 0.0.40
codegen_flags: <defaults>
</compile_context>

<pallas_src>
import functools

import jax
import jax.numpy as jnp
from jax.experimental import pallas as pl
from jax.experimental.pallas import tpu as pltpu

# ----- small, module-consistent hyperparameters (synthetic scale-down) -----
N_EMBD = 128       # stands in for the module's n_embd=384 (kept a multiple of 128)
NUM_HEADS = 4
HEAD_SIZE = 32     # head_size * num_heads == N_EMBD, as in the model
BATCH = 2
SEQ = 8            # <= block_size; the tril mask is generated in-kernel


def _mha_kernel(x_ref, wqkv_ref, wp_ref, bp_ref, o_ref, ctx_ref, *,
                num_heads, head_size, seq_len, block_b):
    # x_ref:    (block_b*T, E)    bf16  activations for this grid step
    # wqkv_ref: (E, 3*H*D)        bf16  fused [Q | K | V] projection
    #                                   (Q columns pre-scaled by head_size^-0.5)
    # wp_ref:   (H*D, E)          bf16  output projection (pre-transposed)
    # bp_ref:   (1, E)            f32   output-projection bias
    # o_ref:    (block_b*T, E)    f32
    # ctx_ref:  (block_b*T, H*D)  f32   VMEM scratch for per-head contexts
    t = seq_len
    h = num_heads
    d = head_size
    hd = h * d

    # ---- fused QKV projection: one wide MXU matmul, f32 acc, ONE bf16 cast ----
    qkv = jnp.dot(x_ref[...], wqkv_ref[...],
                  preferred_element_type=jnp.float32).astype(jnp.bfloat16)

    # additive causal bias (0 on/below diagonal, -1e30 above), hoisted once;
    # shared by every batch element / head.
    row = jax.lax.broadcasted_iota(jnp.int32, (t, t), 0)
    col = jax.lax.broadcasted_iota(jnp.int32, (t, t), 1)
    mask_bias = jnp.where(col <= row, jnp.float32(0.0), jnp.float32(-1e30))

    # ---- attention core: per-(batch, head) 2-D matmuls (inherently batched
    #      on the MXU); softmax stays f32.  Static Python loops, tiny trips.
    for b in range(block_b):
        r0 = b * t
        for hh in range(h):
            c0 = hh * d
            qh = qkv[r0:r0 + t, c0:c0 + d]                       # bf16, pre-scaled
            kh = qkv[r0:r0 + t, hd + c0:hd + c0 + d]             # bf16
            vh = qkv[r0:r0 + t, 2 * hd + c0:2 * hd + c0 + d]     # bf16

            # q @ k^T without an explicit user-level transpose of k
            s = jnp.einsum('td,sd->ts', qh, kh,
                           preferred_element_type=jnp.float32)    # (T, T) f32
            s = s + mask_bias
            s = s - jnp.max(s, axis=-1, keepdims=True)
            p = jnp.exp(s)
            p = p * pl.reciprocal(jnp.sum(p, axis=-1, keepdims=True), approx=True)

            # dropout(wei) is identity in eval mode
            ctx_ref[pl.ds(r0, t), pl.ds(c0, d)] = jnp.dot(
                p.astype(jnp.bfloat16), vh,
                preferred_element_type=jnp.float32)               # (T, D) f32

    # ---- fused output projection: one (BB*T, H*D) x (H*D, E) matmul + bias ----
    y = jnp.dot(ctx_ref[...].astype(jnp.bfloat16), wp_ref[...],
                preferred_element_type=jnp.float32) + bp_ref[...]

    # final dropout is identity in eval mode; lane-dense (E=128) unmasked store
    o_ref[...] = y.astype(o_ref.dtype)


@functools.partial(jax.jit, static_argnames=("num_heads", "block_b"))
def multi_head_attention(x, wqkv, wp, bp, *, num_heads, block_b=None):
    """x: (B, T, E); wqkv: (E, 3*H*D) bf16 (Q pre-scaled); wp: (H*D, E) bf16; bp: (1, E) f32."""
    B, T, E = x.shape
    HD, _ = wp.shape
    D = HD // num_heads
    if block_b is None:
        # Single grid step: best for single-TC v5e/v6e and fills MXU M rows.
        # On v7x (2 TensorCores) pass block_b = B // 2.
        block_b = B
    assert B % block_b == 0
    assert wqkv.shape == (E, 3 * HD)

    # Present activations/outputs as 2-D (B*T, E) slabs: no in-kernel reshapes,
    # and (with E a multiple of 128) fully lane-dense loads/stores.  bf16 input
    # halves the activation HBM->VMEM DMA bytes.
    x2 = x.reshape(B * T, E).astype(jnp.bfloat16)

    kernel = functools.partial(_mha_kernel, num_heads=num_heads, head_size=D,
                               seq_len=T, block_b=block_b)

    out2 = pl.pallas_call(
        kernel,
        out_shape=jax.ShapeDtypeStruct((B * T, E), jnp.float32),
        grid_spec=pltpu.PrefetchScalarGridSpec(
            num_scalar_prefetch=0,
            grid=(B // block_b,),
            in_specs=[
                pl.BlockSpec((block_b * T, E), lambda i: (i, 0)),
                # Weights/bias have constant index maps (resident across steps).
                pl.BlockSpec((E, 3 * HD), lambda i: (0, 0)),
                pl.BlockSpec((HD, E), lambda i: (0, 0)),
                pl.BlockSpec((1, E), lambda i: (0, 0)),
            ],
            out_specs=pl.BlockSpec((block_b * T, E), lambda i: (i, 0)),
            scratch_shapes=[pltpu.VMEM((block_b * T, HD), jnp.float32)],
        ),
        compiler_params=pltpu.CompilerParams(
            dimension_semantics=("parallel",)),
    )(x2, wqkv, wp, bp)
    return out2.reshape(B, T, E)


def _reference(x, wq, wk, wv, wp, bp):
    """Plain-JAX f32 reference mirroring the PyTorch forward (eval mode)."""
    q = jnp.einsum('bte,hed->bhtd', x, wq)
    k = jnp.einsum('bte,hed->bhtd', x, wk)
    v = jnp.einsum('bte,hed->bhtd', x, wv)
    scale = 1.0 / jnp.sqrt(jnp.float32(q.shape[-1]))
    s = jnp.einsum('bhtd,bhsd->bhts', q, k) * scale
    T = x.shape[1]
    mask = jnp.tril(jnp.ones((T, T), dtype=bool))
    s = jnp.where(mask[None, None], s, -jnp.inf)
    p = jax.nn.softmax(s, axis=-1)
    o = jnp.einsum('bhts,bhsd->bhtd', p, v)
    return jnp.einsum('bhtd,hde->bte', o, wp) + bp[0]


if __name__ == "__main__":
    key = jax.random.PRNGKey(0)
    kx, k1, k2, k3, k4, k5 = jax.random.split(key, 6)

    x = jax.random.normal(kx, (BATCH, SEQ, N_EMBD), dtype=jnp.float32)

    # Per-head Q/K/V weights: nn.Linear(n_embd, head_size, bias=False) has
    # weight (head_size, n_embd); we store the transpose (E, D), stacked by head.
    wq = jax.random.normal(k1, (NUM_HEADS, N_EMBD, HEAD_SIZE), jnp.float32) * 0.05
    wk = jax.random.normal(k2, (NUM_HEADS, N_EMBD, HEAD_SIZE), jnp.float32) * 0.05
    wv = jax.random.normal(k3, (NUM_HEADS, N_EMBD, HEAD_SIZE), jnp.float32) * 0.05
    # nn.Linear(head_size*num_heads, n_embd) weight is (E, H*D); store its
    # transpose reshaped to (H, D, E); flattening rows gives head-major columns.
    wp_heads = jax.random.normal(k4, (NUM_HEADS, HEAD_SIZE, N_EMBD), jnp.float32) * 0.05
    bp = jax.random.normal(k5, (1, N_EMBD), jnp.float32) * 0.05

    # ---- fuse weights for the kernel (head-major column layout) ----
    def _stack_heads(w):  # (H, E, D) -> (E, H*D), column = h*D + d
        return jnp.transpose(w, (1, 0, 2)).reshape(N_EMBD, NUM_HEADS * HEAD_SIZE)

    # Fold the 1/sqrt(head_size) attention scale into the Q columns (done in
    # f32 before the bf16 cast, so it is both free and slightly more accurate).
    scale = 1.0 / (HEAD_SIZE ** 0.5)
    wqkv = jnp.concatenate([_stack_heads(wq) * scale,
                            _stack_heads(wk),
                            _stack_heads(wv)], axis=-1)           # (E, 3*H*D)
    wp_fused = wp_heads.reshape(NUM_HEADS * HEAD_SIZE, N_EMBD)    # (H*D, E)

    # bf16 MXU operands (f32 accumulation inside the kernel)
    wqkv_bf16 = wqkv.astype(jnp.bfloat16)
    wp_bf16 = wp_fused.astype(jnp.bfloat16)

    out = multi_head_attention(x, wqkv_bf16, wp_bf16, bp, num_heads=NUM_HEADS)
    out = jax.block_until_ready(out)

    ref = _reference(x, wq, wk, wv, wp_heads, bp)
    assert out.shape == (BATCH, SEQ, N_EMBD)
    # Tolerance loosened vs. pure-f32 because MXU operands are bf16.
    assert jnp.allclose(out, ref, atol=2e-2, rtol=2e-2), "mismatch vs reference"

    print("KERNEL_OK")
</pallas_src>

<mosaic_0001>
module attributes {stable_mosaic.version = 11 : i64} {
  func.func @_mha_kernel(%arg0: i32, %arg1: memref<16x128xbf16, #tpu.memory_space<vmem>>, %arg2: memref<128x384xbf16, #tpu.memory_space<vmem>>, %arg3: memref<128x128xbf16, #tpu.memory_space<vmem>>, %arg4: memref<1x128xf32, #tpu.memory_space<vmem>>, %arg5: memref<16x128xf32, #tpu.memory_space<vmem>>, %arg6: memref<16x128xf32, #tpu.memory_space<vmem>>) attributes {dimension_semantics = [#tpu.dimension_semantics<parallel>], iteration_bounds = array<i64: 1>, scalar_prefetch = 0 : i64, scratch_operands = 1 : i64, tpu.core_type = #tpu.core_type<tc>, window_params = [{transform_indices = @transform_0, window_bounds = array<i64: 16, 128>}, {pipeline_mode = #tpu.pipeline_mode<synchronous>, transform_indices = @transform_1, window_bounds = array<i64: 128, 384>}, {pipeline_mode = #tpu.pipeline_mode<synchronous>, transform_indices = @transform_2, window_bounds = array<i64: 128, 128>}, {pipeline_mode = #tpu.pipeline_mode<synchronous>, transform_indices = @transform_3, window_bounds = array<i64: 1, 128>}, {transform_indices = @transform_4, window_bounds = array<i64: 16, 128>}]} {
    %c0 = arith.constant 0 : index
    %c0_0 = arith.constant 0 : index
    %0 = vector.load %arg1[%c0, %c0_0] : memref<16x128xbf16, #tpu.memory_space<vmem>>, vector<16x128xbf16>
    %c0_1 = arith.constant 0 : index
    %c0_2 = arith.constant 0 : index
    %1 = vector.load %arg2[%c0_1, %c0_2] : memref<128x384xbf16, #tpu.memory_space<vmem>>, vector<128x384xbf16>
    %cst = arith.constant dense<0.000000e+00> : vector<16x384xf32>
    %2 = tpu.matmul %0, %1, %cst {dimension_numbers = #tpu.dot_dimension_numbers<[1], [0], [0], [1], [0, 0, 1, 1], [], []>} : vector<16x128xbf16>, vector<128x384xbf16>, vector<16x384xf32> -> vector<16x384xf32>
    %3 = arith.truncf %2 : vector<16x384xf32> to vector<16x384xbf16>
    %4 = tpu.iota {dimensions = array<i32: 0>} : vector<8x8xi32>
    %5 = tpu.iota {dimensions = array<i32: 1>} : vector<8x8xi32>
    %6 = arith.cmpi sle, %5, %4 : vector<8x8xi32>
    %cst_3 = arith.constant 0.000000e+00 : f32
    %cst_4 = arith.constant -1.000000e+30 : f32
    %7 = vector.broadcast %cst_3 : f32 to vector<8x8xf32>
    %8 = vector.broadcast %cst_4 : f32 to vector<8x8xf32>
    %9 = arith.select %6, %7, %8 : vector<8x8xi1>, vector<8x8xf32>
    %10 = vector.extract_strided_slice %3 {offsets = [0, 0], sizes = [8, 32], strides = [1, 1]} : vector<16x384xbf16> to vector<8x32xbf16>
    %11 = vector.extract_strided_slice %3 {offsets = [0, 128], sizes = [8, 32], strides = [1, 1]} : vector<16x384xbf16> to vector<8x32xbf16>
    %12 = vector.extract_strided_slice %3 {offsets = [0, 256], sizes = [8, 32], strides = [1, 1]} : vector<16x384xbf16> to vector<8x32xbf16>
    "tpu.trace_start"() <{level = 10 : i32, message = "td,sd->ts"}> : () -> ()
    %cst_5 = arith.constant dense<0.000000e+00> : vector<8x8xf32>
    %13 = tpu.matmul %10, %11, %cst_5 {dimension_numbers = #tpu.dot_dimension_numbers<[1], [1], [0], [0], [0, 0, 1, 0], [], []>} : vector<8x32xbf16>, vector<8x32xbf16>, vector<8x8xf32> -> vector<8x8xf32>
    "tpu.trace_stop"() : () -> ()
    %14 = arith.addf %13, %9 : vector<8x8xf32>
    %cst_6 = arith.constant dense<0xFF800000> : vector<8xf32>
    %15 = vector.multi_reduction <maximumf>, %14, %cst_6 [1] : vector<8x8xf32> to vector<8xf32>
    %16 = vector.shape_cast %15 : vector<8xf32> to vector<8x1xf32>
    %17 = vector.broadcast %16 : vector<8x1xf32> to vector<8x8xf32>
    %18 = arith.subf %14, %17 : vector<8x8xf32>
    %19 = math.exp %18 : vector<8x8xf32>
    %cst_7 = arith.constant dense<0.000000e+00> : vector<8xf32>
    %20 = vector.multi_reduction <add>, %19, %cst_7 [1] : vector<8x8xf32> to vector<8xf32>
    %21 = vector.shape_cast %20 : vector<8xf32> to vector<8x1xf32>
    %22 = tpu.reciprocal %21 {approx = true} : vector<8x1xf32> -> vector<8x1xf32>
    %23 = vector.broadcast %22 : vector<8x1xf32> to vector<8x8xf32>
    %24 = arith.mulf %19, %23 : vector<8x8xf32>
    %25 = arith.truncf %24 : vector<8x8xf32> to vector<8x8xbf16>
    %cst_8 = arith.constant dense<0.000000e+00> : vector<8x32xf32>
    %26 = tpu.matmul %25, %12, %cst_8 {dimension_numbers = #tpu.dot_dimension_numbers<[1], [0], [0], [1], [0, 0, 1, 1], [], []>} : vector<8x8xbf16>, vector<8x32xbf16>, vector<8x32xf32> -> vector<8x32xf32>
    %c0_9 = arith.constant 0 : index
    %c0_10 = arith.constant 0 : index
    %27 = vector.load %arg6[%c0_9, %c0_10] : memref<16x128xf32, #tpu.memory_space<vmem>>, vector<8x32xf32>
    tpu.vector_store %arg6[%c0_9, %c0_10], %26 {strides = array<i32>} : memref<16x128xf32, #tpu.memory_space<vmem>>, vector<8x32xf32>,
    %28 = vector.extract_strided_slice %3 {offsets = [0, 32], sizes = [8, 32], strides = [1, 1]} : vector<16x384xbf16> to vector<8x32xbf16>
    %29 = vector.extract_strided_slice %3 {offsets = [0, 160], sizes = [8, 32], strides = [1, 1]} : vector<16x384xbf16> to vector<8x32xbf16>
    %30 = vector.extract_strided_slice %3 {offsets = [0, 288], sizes = [8, 32], strides = [1, 1]} : vector<16x384xbf16> to vector<8x32xbf16>
    "tpu.trace_start"() <{level = 10 : i32, message = "td,sd->ts"}> : () -> ()
    %cst_11 = arith.constant dense<0.000000e+00> : vector<8x8xf32>
    %31 = tpu.matmul %28, %29, %cst_11 {dimension_numbers = #tpu.dot_dimension_numbers<[1], [1], [0], [0], [0, 0, 1, 0], [], []>} : vector<8x32xbf16>, vector<8x32xbf16>, vector<8x8xf32> -> vector<8x8xf32>
    "tpu.trace_stop"() : () -> ()
    %32 = arith.addf %31, %9 : vector<8x8xf32>
    %cst_12 = arith.constant dense<0xFF800000> : vector<8xf32>
    %33 = vector.multi_reduction <maximumf>, %32, %cst_12 [1] : vector<8x8xf32> to vector<8xf32>
    %34 = vector.shape_cast %33 : vector<8xf32> to vector<8x1xf32>
    %35 = vector.broadcast %34 : vector<8x1xf32> to vector<8x8xf32>
    %36 = arith.subf %32, %35 : vector<8x8xf32>
    %37 = math.exp %36 : vector<8x8xf32>
    %cst_13 = arith.constant dense<0.000000e+00> : vector<8xf32>
    %38 = vector.multi_reduction <add>, %37, %cst_13 [1] : vector<8x8xf32> to vector<8xf32>
    %39 = vector.shape_cast %38 : vector<8xf32> to vector<8x1xf32>
    %40 = tpu.reciprocal %39 {approx = true} : vector<8x1xf32> -> vector<8x1xf32>
    %41 = vector.broadcast %40 : vector<8x1xf32> to vector<8x8xf32>
    %42 = arith.mulf %37, %41 : vector<8x8xf32>
    %43 = arith.truncf %42 : vector<8x8xf32> to vector<8x8xbf16>
    %cst_14 = arith.constant dense<0.000000e+00> : vector<8x32xf32>
    %44 = tpu.matmul %43, %30, %cst_14 {dimension_numbers = #tpu.dot_dimension_numbers<[1], [0], [0], [1], [0, 0, 1, 1], [], []>} : vector<8x8xbf16>, vector<8x32xbf16>, vector<8x32xf32> -> vector<8x32xf32>
    %c0_15 = arith.constant 0 : index
    %c32 = arith.constant 32 : index
    %45 = vector.load %arg6[%c0_15, %c32] : memref<16x128xf32, #tpu.memory_space<vmem>>, vector<8x32xf32>
    tpu.vector_store %arg6[%c0_15, %c32], %44 {strides = array<i32>} : memref<16x128xf32, #tpu.memory_space<vmem>>, vector<8x32xf32>,
    %46 = vector.extract_strided_slice %3 {offsets = [0, 64], sizes = [8, 32], strides = [1, 1]} : vector<16x384xbf16> to vector<8x32xbf16>
    %47 = vector.extract_strided_slice %3 {offsets = [0, 192], sizes = [8, 32], strides = [1, 1]} : vector<16x384xbf16> to vector<8x32xbf16>
    %48 = vector.extract_strided_slice %3 {offsets = [0, 320], sizes = [8, 32], strides = [1, 1]} : vector<16x384xbf16> to vector<8x32xbf16>
    "tpu.trace_start"() <{level = 10 : i32, message = "td,sd->ts"}> : () -> ()
    %cst_16 = arith.constant dense<0.000000e+00> : vector<8x8xf32>
    %49 = tpu.matmul %46, %47, %cst_16 {dimension_numbers = #tpu.dot_dimension_numbers<[1], [1], [0], [0], [0, 0, 1, 0], [], []>} : vector<8x32xbf16>, vector<8x32xbf16>, vector<8x8xf32> -> vector<8x8xf32>
    "tpu.trace_stop"() : () -> ()
    %50 = arith.addf %49, %9 : vector<8x8xf32>
    %cst_17 = arith.constant dense<0xFF800000> : vector<8xf32>
    %51 = vector.multi_reduction <maximumf>, %50, %cst_17 [1] : vector<8x8xf32> to vector<8xf32>
    %52 = vector.shape_cast %51 : vector<8xf32> to vector<8x1xf32>
    %53 = vector.broadcast %52 : vector<8x1xf32> to vector<8x8xf32>
    %54 = arith.subf %50, %53 : vector<8x8xf32>
    %55 = math.exp %54 : vector<8x8xf32>
    %cst_18 = arith.constant dense<0.000000e+00> : vector<8xf32>
    %56 = vector.multi_reduction <add>, %55, %cst_18 [1] : vector<8x8xf32> to vector<8xf32>
    %57 = vector.shape_cast %56 : vector<8xf32> to vector<8x1xf32>
    %58 = tpu.reciprocal %57 {approx = true} : vector<8x1xf32> -> vector<8x1xf32>
    %59 = vector.broadcast %58 : vector<8x1xf32> to vector<8x8xf32>
    %60 = arith.mulf %55, %59 : vector<8x8xf32>
    %61 = arith.truncf %60 : vector<8x8xf32> to vector<8x8xbf16>
    %cst_19 = arith.constant dense<0.000000e+00> : vector<8x32xf32>
    %62 = tpu.matmul %61, %48, %cst_19 {dimension_numbers = #tpu.dot_dimension_numbers<[1], [0], [0], [1], [0, 0, 1, 1], [], []>} : vector<8x8xbf16>, vector<8x32xbf16>, vector<8x32xf32> -> vector<8x32xf32>
    %c0_20 = arith.constant 0 : index
    %c64 = arith.constant 64 : index
    %63 = vector.load %arg6[%c0_20, %c64] : memref<16x128xf32, #tpu.memory_space<vmem>>, vector<8x32xf32>
    tpu.vector_store %arg6[%c0_20, %c64], %62 {strides = array<i32>} : memref<16x128xf32, #tpu.memory_space<vmem>>, vector<8x32xf32>,
    %64 = vector.extract_strided_slice %3 {offsets = [0, 96], sizes = [8, 32], strides = [1, 1]} : vector<16x384xbf16> to vector<8x32xbf16>
    %65 = vector.extract_strided_slice %3 {offsets = [0, 224], sizes = [8, 32], strides = [1, 1]} : vector<16x384xbf16> to vector<8x32xbf16>
    %66 = vector.extract_strided_slice %3 {offsets = [0, 352], sizes = [8, 32], strides = [1, 1]} : vector<16x384xbf16> to vector<8x32xbf16>
    "tpu.trace_start"() <{level = 10 : i32, message = "td,sd->ts"}> : () -> ()
    %cst_21 = arith.constant dense<0.000000e+00> : vector<8x8xf32>
    %67 = tpu.matmul %64, %65, %cst_21 {dimension_numbers = #tpu.dot_dimension_numbers<[1], [1], [0], [0], [0, 0, 1, 0], [], []>} : vector<8x32xbf16>, vector<8x32xbf16>, vector<8x8xf32> -> vector<8x8xf32>
    "tpu.trace_stop"() : () -> ()
    %68 = arith.addf %67, %9 : vector<8x8xf32>
    %cst_22 = arith.constant dense<0xFF800000> : vector<8xf32>
    %69 = vector.multi_reduction <maximumf>, %68, %cst_22 [1] : vector<8x8xf32> to vector<8xf32>
    %70 = vector.shape_cast %69 : vector<8xf32> to vector<8x1xf32>
    %71 = vector.broadcast %70 : vector<8x1xf32> to vector<8x8xf32>
    %72 = arith.subf %68, %71 : vector<8x8xf32>
    %73 = math.exp %72 : vector<8x8xf32>
    %cst_23 = arith.constant dense<0.000000e+00> : vector<8xf32>
    %74 = vector.multi_reduction <add>, %73, %cst_23 [1] : vector<8x8xf32> to vector<8xf32>
    %75 = vector.shape_cast %74 : vector<8xf32> to vector<8x1xf32>
    %76 = tpu.reciprocal %75 {approx = true} : vector<8x1xf32> -> vector<8x1xf32>
    %77 = vector.broadcast %76 : vector<8x1xf32> to vector<8x8xf32>
    %78 = arith.mulf %73, %77 : vector<8x8xf32>
    %79 = arith.truncf %78 : vector<8x8xf32> to vector<8x8xbf16>
    %cst_24 = arith.constant dense<0.000000e+00> : vector<8x32xf32>
    %80 = tpu.matmul %79, %66, %cst_24 {dimension_numbers = #tpu.dot_dimension_numbers<[1], [0], [0], [1], [0, 0, 1, 1], [], []>} : vector<8x8xbf16>, vector<8x32xbf16>, vector<8x32xf32> -> vector<8x32xf32>
    %c0_25 = arith.constant 0 : index
    %c96 = arith.constant 96 : index
    %81 = vector.load %arg6[%c0_25, %c96] : memref<16x128xf32, #tpu.memory_space<vmem>>, vector<8x32xf32>
    tpu.vector_store %arg6[%c0_25, %c96], %80 {strides = array<i32>} : memref<16x128xf32, #tpu.memory_space<vmem>>, vector<8x32xf32>,
    %82 = vector.extract_strided_slice %3 {offsets = [8, 0], sizes = [8, 32], strides = [1, 1]} : vector<16x384xbf16> to vector<8x32xbf16>
    %83 = vector.extract_strided_slice %3 {offsets = [8, 128], sizes = [8, 32], strides = [1, 1]} : vector<16x384xbf16> to vector<8x32xbf16>
    %84 = vector.extract_strided_slice %3 {offsets = [8, 256], sizes = [8, 32], strides = [1, 1]} : vector<16x384xbf16> to vector<8x32xbf16>
    "tpu.trace_start"() <{level = 10 : i32, message = "td,sd->ts"}> : () -> ()
    %cst_26 = arith.constant dense<0.000000e+00> : vector<8x8xf32>
    %85 = tpu.matmul %82, %83, %cst_26 {dimension_numbers = #tpu.dot_dimension_numbers<[1], [1], [0], [0], [0, 0, 1, 0], [], []>} : vector<8x32xbf16>, vector<8x32xbf16>, vector<8x8xf32> -> vector<8x8xf32>
    "tpu.trace_stop"() : () -> ()
    %86 = arith.addf %85, %9 : vector<8x8xf32>
    %cst_27 = arith.constant dense<0xFF800000> : vector<8xf32>
    %87 = vector.multi_reduction <maximumf>, %86, %cst_27 [1] : vector<8x8xf32> to vector<8xf32>
    %88 = vector.shape_cast %87 : vector<8xf32> to vector<8x1xf32>
    %89 = vector.broadcast %88 : vector<8x1xf32> to vector<8x8xf32>
    %90 = arith.subf %86, %89 : vector<8x8xf32>
    %91 = math.exp %90 : vector<8x8xf32>
    %cst_28 = arith.constant dense<0.000000e+00> : vector<8xf32>
    %92 = vector.multi_reduction <add>, %91, %cst_28 [1] : vector<8x8xf32> to vector<8xf32>
    %93 = vector.shape_cast %92 : vector<8xf32> to vector<8x1xf32>
    %94 = tpu.reciprocal %93 {approx = true} : vector<8x1xf32> -> vector<8x1xf32>
    %95 = vector.broadcast %94 : vector<8x1xf32> to vector<8x8xf32>
    %96 = arith.mulf %91, %95 : vector<8x8xf32>
    %97 = arith.truncf %96 : vector<8x8xf32> to vector<8x8xbf16>
    %cst_29 = arith.constant dense<0.000000e+00> : vector<8x32xf32>
    %98 = tpu.matmul %97, %84, %cst_29 {dimension_numbers = #tpu.dot_dimension_numbers<[1], [0], [0], [1], [0, 0, 1, 1], [], []>} : vector<8x8xbf16>, vector<8x32xbf16>, vector<8x32xf32> -> vector<8x32xf32>
    %c8 = arith.constant 8 : index
    %c0_30 = arith.constant 0 : index
    %99 = vector.load %arg6[%c8, %c0_30] : memref<16x128xf32, #tpu.memory_space<vmem>>, vector<8x32xf32>
    tpu.vector_store %arg6[%c8, %c0_30], %98 {strides = array<i32>} : memref<16x128xf32, #tpu.memory_space<vmem>>, vector<8x32xf32>,
    %100 = vector.extract_strided_slice %3 {offsets = [8, 32], sizes = [8, 32], strides = [1, 1]} : vector<16x384xbf16> to vector<8x32xbf16>
    %101 = vector.extract_strided_slice %3 {offsets = [8, 160], sizes = [8, 32], strides = [1, 1]} : vector<16x384xbf16> to vector<8x32xbf16>
    %102 = vector.extract_strided_slice %3 {offsets = [8, 288], sizes = [8, 32], strides = [1, 1]} : vector<16x384xbf16> to vector<8x32xbf16>
    "tpu.trace_start"() <{level = 10 : i32, message = "td,sd->ts"}> : () -> ()
    %cst_31 = arith.constant dense<0.000000e+00> : vector<8x8xf32>
    %103 = tpu.matmul %100, %101, %cst_31 {dimension_numbers = #tpu.dot_dimension_numbers<[1], [1], [0], [0], [0, 0, 1, 0], [], []>} : vector<8x32xbf16>, vector<8x32xbf16>, vector<8x8xf32> -> vector<8x8xf32>
    "tpu.trace_stop"() : () -> ()
    %104 = arith.addf %103, %9 : vector<8x8xf32>
    %cst_32 = arith.constant dense<0xFF800000> : vector<8xf32>
    %105 = vector.multi_reduction <maximumf>, %104, %cst_32 [1] : vector<8x8xf32> to vector<8xf32>
    %106 = vector.shape_cast %105 : vector<8xf32> to vector<8x1xf32>
    %107 = vector.broadcast %106 : vector<8x1xf32> to vector<8x8xf32>
    %108 = arith.subf %104, %107 : vector<8x8xf32>
    %109 = math.exp %108 : vector<8x8xf32>
    %cst_33 = arith.constant dense<0.000000e+00> : vector<8xf32>
    %110 = vector.multi_reduction <add>, %109, %cst_33 [1] : vector<8x8xf32> to vector<8xf32>
    %111 = vector.shape_cast %110 : vector<8xf32> to vector<8x1xf32>
    %112 = tpu.reciprocal %111 {approx = true} : vector<8x1xf32> -> vector<8x1xf32>
    %113 = vector.broadcast %112 : vector<8x1xf32> to vector<8x8xf32>
    %114 = arith.mulf %109, %113 : vector<8x8xf32>
    %115 = arith.truncf %114 : vector<8x8xf32> to vector<8x8xbf16>
    %cst_34 = arith.constant dense<0.000000e+00> : vector<8x32xf32>
    %116 = tpu.matmul %115, %102, %cst_34 {dimension_numbers = #tpu.dot_dimension_numbers<[1], [0], [0], [1], [0, 0, 1, 1], [], []>} : vector<8x8xbf16>, vector<8x32xbf16>, vector<8x32xf32> -> vector<8x32xf32>
    %c8_35 = arith.constant 8 : index
    %c32_36 = arith.constant 32 : index
    %117 = vector.load %arg6[%c8_35, %c32_36] : memref<16x128xf32, #tpu.memory_space<vmem>>, vector<8x32xf32>
    tpu.vector_store %arg6[%c8_35, %c32_36], %116 {strides = array<i32>} : memref<16x128xf32, #tpu.memory_space<vmem>>, vector<8x32xf32>,
    %118 = vector.extract_strided_slice %3 {offsets = [8, 64], sizes = [8, 32], strides = [1, 1]} : vector<16x384xbf16> to vector<8x32xbf16>
    %119 = vector.extract_strided_slice %3 {offsets = [8, 192], sizes = [8, 32], strides = [1, 1]} : vector<16x384xbf16> to vector<8x32xbf16>
    %120 = vector.extract_strided_slice %3 {offsets = [8, 320], sizes = [8, 32], strides = [1, 1]} : vector<16x384xbf16> to vector<8x32xbf16>
    "tpu.trace_start"() <{level = 10 : i32, message = "td,sd->ts"}> : () -> ()
    %cst_37 = arith.constant dense<0.000000e+00> : vector<8x8xf32>
    %121 = tpu.matmul %118, %119, %cst_37 {dimension_numbers = #tpu.dot_dimension_numbers<[1], [1], [0], [0], [0, 0, 1, 0], [], []>} : vector<8x32xbf16>, vector<8x32xbf16>, vector<8x8xf32> -> vector<8x8xf32>
    "tpu.trace_stop"() : () -> ()
    %122 = arith.addf %121, %9 : vector<8x8xf32>
    %cst_38 = arith.constant dense<0xFF800000> : vector<8xf32>
    %123 = vector.multi_reduction <maximumf>, %122, %cst_38 [1] : vector<8x8xf32> to vector<8xf32>
    %124 = vector.shape_cast %123 : vector<8xf32> to vector<8x1xf32>
    %125 = vector.broadcast %124 : vector<8x1xf32> to vector<8x8xf32>
    %126 = arith.subf %122, %125 : vector<8x8xf32>
    %127 = math.exp %126 : vector<8x8xf32>
    %cst_39 = arith.constant dense<0.000000e+00> : vector<8xf32>
    %128 = vector.multi_reduction <add>, %127, %cst_39 [1] : vector<8x8xf32> to vector<8xf32>
    %129 = vector.shape_cast %128 : vector<8xf32> to vector<8x1xf32>
    %130 = tpu.reciprocal %129 {approx = true} : vector<8x1xf32> -> vector<8x1xf32>
    %131 = vector.broadcast %130 : vector<8x1xf32> to vector<8x8xf32>
    %132 = arith.mulf %127, %131 : vector<8x8xf32>
    %133 = arith.truncf %132 : vector<8x8xf32> to vector<8x8xbf16>
    %cst_40 = arith.constant dense<0.000000e+00> : vector<8x32xf32>
    %134 = tpu.matmul %133, %120, %cst_40 {dimension_numbers = #tpu.dot_dimension_numbers<[1], [0], [0], [1], [0, 0, 1, 1], [], []>} : vector<8x8xbf16>, vector<8x32xbf16>, vector<8x32xf32> -> vector<8x32xf32>
    %c8_41 = arith.constant 8 : index
    %c64_42 = arith.constant 64 : index
    %135 = vector.load %arg6[%c8_41, %c64_42] : memref<16x128xf32, #tpu.memory_space<vmem>>, vector<8x32xf32>
    tpu.vector_store %arg6[%c8_41, %c64_42], %134 {strides = array<i32>} : memref<16x128xf32, #tpu.memory_space<vmem>>, vector<8x32xf32>,
    %136 = vector.extract_strided_slice %3 {offsets = [8, 96], sizes = [8, 32], strides = [1, 1]} : vector<16x384xbf16> to vector<8x32xbf16>
    %137 = vector.extract_strided_slice %3 {offsets = [8, 224], sizes = [8, 32], strides = [1, 1]} : vector<16x384xbf16> to vector<8x32xbf16>
    %138 = vector.extract_strided_slice %3 {offsets = [8, 352], sizes = [8, 32], strides = [1, 1]} : vector<16x384xbf16> to vector<8x32xbf16>
    "tpu.trace_start"() <{level = 10 : i32, message = "td,sd->ts"}> : () -> ()
    %cst_43 = arith.constant dense<0.000000e+00> : vector<8x8xf32>
    %139 = tpu.matmul %136, %137, %cst_43 {dimension_numbers = #tpu.dot_dimension_numbers<[1], [1], [0], [0], [0, 0, 1, 0], [], []>} : vector<8x32xbf16>, vector<8x32xbf16>, vector<8x8xf32> -> vector<8x8xf32>
    "tpu.trace_stop"() : () -> ()
    %140 = arith.addf %139, %9 : vector<8x8xf32>
    %cst_44 = arith.constant dense<0xFF800000> : vector<8xf32>
    %141 = vector.multi_reduction <maximumf>, %140, %cst_44 [1] : vector<8x8xf32> to vector<8xf32>
    %142 = vector.shape_cast %141 : vector<8xf32> to vector<8x1xf32>
    %143 = vector.broadcast %142 : vector<8x1xf32> to vector<8x8xf32>
    %144 = arith.subf %140, %143 : vector<8x8xf32>
    %145 = math.exp %144 : vector<8x8xf32>
    %cst_45 = arith.constant dense<0.000000e+00> : vector<8xf32>
    %146 = vector.multi_reduction <add>, %145, %cst_45 [1] : vector<8x8xf32> to vector<8xf32>
    %147 = vector.shape_cast %146 : vector<8xf32> to vector<8x1xf32>
    %148 = tpu.reciprocal %147 {approx = true} : vector<8x1xf32> -> vector<8x1xf32>
    %149 = vector.broadcast %148 : vector<8x1xf32> to vector<8x8xf32>
    %150 = arith.mulf %145, %149 : vector<8x8xf32>
    %151 = arith.truncf %150 : vector<8x8xf32> to vector<8x8xbf16>
    %cst_46 = arith.constant dense<0.000000e+00> : vector<8x32xf32>
    %152 = tpu.matmul %151, %138, %cst_46 {dimension_numbers = #tpu.dot_dimension_numbers<[1], [0], [0], [1], [0, 0, 1, 1], [], []>} : vector<8x8xbf16>, vector<8x32xbf16>, vector<8x32xf32> -> vector<8x32xf32>
    %c8_47 = arith.constant 8 : index
    %c96_48 = arith.constant 96 : index
    %153 = vector.load %arg6[%c8_47, %c96_48] : memref<16x128xf32, #tpu.memory_space<vmem>>, vector<8x32xf32>
    tpu.vector_store %arg6[%c8_47, %c96_48], %152 {strides = array<i32>} : memref<16x128xf32, #tpu.memory_space<vmem>>, vector<8x32xf32>,
    %c0_49 = arith.constant 0 : index
    %c0_50 = arith.constant 0 : index
    %154 = vector.load %arg6[%c0_49, %c0_50] : memref<16x128xf32, #tpu.memory_space<vmem>>, vector<16x128xf32>
    %155 = arith.truncf %154 : vector<16x128xf32> to vector<16x128xbf16>
    %c0_51 = arith.constant 0 : index
    %c0_52 = arith.constant 0 : index
    %156 = vector.load %arg3[%c0_51, %c0_52] : memref<128x128xbf16, #tpu.memory_space<vmem>>, vector<128x128xbf16>
    %cst_53 = arith.constant dense<0.000000e+00> : vector<16x128xf32>
    %157 = tpu.matmul %155, %156, %cst_53 {dimension_numbers = #tpu.dot_dimension_numbers<[1], [0], [0], [1], [0, 0, 1, 1], [], []>} : vector<16x128xbf16>, vector<128x128xbf16>, vector<16x128xf32> -> vector<16x128xf32>
    %c0_54 = arith.constant 0 : index
    %c0_55 = arith.constant 0 : index
    %158 = vector.load %arg4[%c0_54, %c0_55] : memref<1x128xf32, #tpu.memory_space<vmem>>, vector<1x128xf32>
    %159 = vector.broadcast %158 : vector<1x128xf32> to vector<16x128xf32>
    %160 = arith.addf %157, %159 : vector<16x128xf32>
    %c0_56 = arith.constant 0 : index
    %c0_57 = arith.constant 0 : index
    %161 = vector.load %arg5[%c0_56, %c0_57] : memref<16x128xf32, #tpu.memory_space<vmem>>, vector<16x128xf32>
    tpu.vector_store %arg5[%c0_56, %c0_57], %160 {strides = array<i32>} : memref<16x128xf32, #tpu.memory_space<vmem>>, vector<16x128xf32>,
    return
  }
  func.func @transform_0(%arg0: i32) -> (i32, i32) {
    %c0_i32 = arith.constant 0 : i32
    %c0_i32_0 = arith.constant 0 : i32
    return %arg0, %c0_i32 : i32, i32
  }
  func.func @transform_1(%arg0: i32) -> (i32, i32) {
    %c0_i32 = arith.constant 0 : i32
    %c0_i32_0 = arith.constant 0 : i32
    %c0_i32_1 = arith.constant 0 : i32
    return %c0_i32, %c0_i32_0 : i32, i32
  }
  func.func @transform_2(%arg0: i32) -> (i32, i32) {
    %c0_i32 = arith.constant 0 : i32
    %c0_i32_0 = arith.constant 0 : i32
    %c0_i32_1 = arith.constant 0 : i32
    return %c0_i32, %c0_i32_0 : i32, i32
  }
  func.func @transform_3(%arg0: i32) -> (i32, i32) {
    %c0_i32 = arith.constant 0 : i32
    %c0_i32_0 = arith.constant 0 : i32
    %c0_i32_1 = arith.constant 0 : i32
    return %c0_i32, %c0_i32_0 : i32, i32
  }
  func.func @transform_4(%arg0: i32) -> (i32, i32) {
    %c0_i32 = arith.constant 0 : i32
    %c0_i32_0 = arith.constant 0 : i32
    return %arg0, %c0_i32 : i32, i32
  }
}

</mosaic_0001>

<bundles_post_ra>
// kernel: multi_head_attention.1
= control target key start
LH: loop header
LB: loop body
LE: loop exit
PB: predicated region body
PF: predicated region fallthrough
CT: control target
= control target key end

     0   :  { %9 = vsyncpa [#allocation4], 0  ;;  %s2030_s0 = inlined_call_operand.vmem [shape: bf16[16,128], index: 0, kind: input, shape index: {}]   ;;  %s2031_s1 = inlined_call_operand.hbm [shape: bf16[128,384], index: 1, kind: input, shape index: {}]   ;;  %s2032_s2 = inlined_call_operand.hbm [shape: bf16[128,128], index: 2, kind: input, shape index: {}]   ;;  %s2033_s3 = inlined_call_operand.vmem [shape: f32[1,128], index: 3, kind: input, shape index: {}]   ;;  %s2034_s4 = inlined_call_operand.hbm [shape: f32[16,128], index: 4, kind: output, shape index: {}]  }
   0x1   :  { %10 = vsyncpa [#allocation7], 0 }
   0x2   :  { %11 = vsyncpa [#allocation5], 0  ;;  %s1751_s15 = smov [#allocation3]   ;;  %s1679_s19 = scalar_lea.hbm %s2031_s1, 3072 }
   0x3   :  { %s19_s16 = sshll.u32 %s1751_s15, 4  ;;  %p1680_p0 = scmp.ne.s32.totalorder %s2031_s1, %s1679_s19  ;;  %s20_s16 = int_to_ptr.vmem [resolvable:$true] %s19_s16 }
   0x4   :  { %p1683_p1 = scmp.lt.u32.totalorder %s1679_s19, %s2031_s1 }
   0x6   :  { %p1685_p2 = pnand %p1683_p1, %p1680_p0 }
   0x8   :  { %1688 = shalt.err (!%p1685_p2)
}
   0x9   :  { %s1689_s24 = scalar_lea.vmem %s20_s16, 3072  ;;  %p1694_p4 = scmp.lt.s32.totalorder %s20_s16, %s20_s16 }
   0xa   :  { %p1690_p3 = scmp.ne.s32.totalorder %s20_s16, %s1689_s24  ;;  %p1695_p5 = scmp.lt.s32.totalorder %s1689_s24, %s1689_s24 }
   0xc   :  { %p1696_p6 = por %p1695_p5, %p1694_p4 }
   0xe   :  { %p1697_p7 = pnand %p1696_p6, %p1690_p3 }
  0x10   :  { %1700 = shalt.err (!%p1697_p7)
}
  0x11   :  { %s1752_s25 = smov 192   ;;  %s1753_s26 = smov 12  }
  0x12   :  { %25 = dma.hbm_to_vmem [thread:$0]  %s2031_s1, 3072, %s20_s16, [#allocation4], %s1752_s25, %s1752_s25, %s1753_s26  }
  0x13   :  { %s1754_s29 = smov [#allocation6]   ;;  %s1701_s7 = scalar_lea.hbm %s2032_s2, 1024 }
  0x14   :  { %s31_s30 = sshll.u32 %s1754_s29, 4  ;;  %p1702_p8 = scmp.ne.s32.totalorder %s2032_s2, %s1701_s7  ;;  %s32_s30 = int_to_ptr.vmem [resolvable:$true] %s31_s30 }
  0x15   :  { %p1705_p9 = scmp.lt.u32.totalorder %s1701_s7, %s2032_s2 }
  0x17   :  { %p1707_p10 = pnand %p1705_p9, %p1702_p8 }
  0x19   :  { %1710 = shalt.err (!%p1707_p10)
}
  0x1a   :  { %s1711_s12 = scalar_lea.vmem %s32_s30, 1024  ;;  %p1716_p12 = scmp.lt.s32.totalorder %s32_s30, %s32_s30 }
  0x1b   :  { %p1712_p11 = scmp.ne.s32.totalorder %s32_s30, %s1711_s12  ;;  %p1717_p13 = scmp.lt.s32.totalorder %s1711_s12, %s1711_s12 }
  0x1d   :  { %p1718_p0 = por %p1717_p13, %p1716_p12 }
  0x1f   :  { %p1719_p1 = pnand %p1718_p0, %p1712_p11 }
  0x21   :  { %1722 = shalt.err (!%p1719_p1)
}
  0x22   :  { %s1755_s1 = smov 64   ;;  %s1756_s13 = smov 4  }
  0x23   :  { %37 = dma.hbm_to_vmem [thread:$0]  %s2032_s2, 1024, %s32_s30, [#allocation7], %s1755_s1, %s1755_s1, %s1756_s13  }
  0x24   :  { %1745 = dma.done.wait [#allocation4], 3072  }
  0x25   :  { %1746 = vsyncadd [#allocation4], 4294964224 }
  0x26   :  { %1747 = dma.done.wait [#allocation7], 1024  }
  0x27   :  { %1748 = vsyncadd [#allocation7], 4294966272  ;;  %v1757_v0 = vmov 0   ;;  %v1758_v1 = vmov 0.0   ;;  %v1606_v2 = vld [vmem:[#allocation3 + $0x4] ss:$12 sps:$4 sm:$0xff]   ;;  %v302_v42 = vlaneseq }
  0x28   :  { %247 = vmatprep.mubr.bf16.mxu0 %v1757_v0  ;;  %1455 = vmatprep.subr.bf16.mxu1 %v1758_v1  ;;  %v1608_v3 = vld [vmem:[#allocation3] ss:$12 sps:$4 sm:$0xff]   ;;  %v1609_v4 = vld [vmem:[#allocation3 + $0x1c] ss:$12 sps:$4 sm:$0xff]   ;;  %v1611_v5 = vld [vmem:[#allocation3 + $0x18] ss:$12 sps:$4 sm:$0xff]  }
  0x29   :  { %215 = vmatprep.subr.bf16.mxu0 %v1606_v2  ;;  %v1612_v6 = vld [vmem:[#allocation3 + $0x34] ss:$12 sps:$4 sm:$0xff]   ;;  %v1614_v7 = vld [vmem:[#allocation3 + $0x30] ss:$12 sps:$4 sm:$0xff]   ;;  %v1615_v8 = vld [vmem:[#allocation3 + $0x4c] ss:$12 sps:$4 sm:$0xff]  }
  0x2a   :  { %216 = vmatpush1.bf16.msra.mxu0 %v1608_v3  ;;  %v1617_v9 = vld [vmem:[#allocation3 + $0x48] ss:$12 sps:$4 sm:$0xff]   ;;  %v1618_v10 = vld [vmem:[#allocation3 + $0x64] ss:$12 sps:$4 sm:$0xff]   ;;  %v1632_v12 = vld [vmem:[#allocation3 + $0x20] ss:$12 sps:$4 sm:$0xff]  }
  0x2b   :  { %217 = vmatprep.subr.bf16.mxu0 %v1609_v4  ;;  %v1631_v11 = vld [vmem:[#allocation3 + $0x8] ss:$12 sps:$4 sm:$0xff]   ;;  %v1620_v13 = vld [vmem:[#allocation3 + $0x60] ss:$12 sps:$4 sm:$0xff]   ;;  %v1623_v15 = vld [vmem:[#allocation3 + $0x78] ss:$12 sps:$4 sm:$0xff]  }
  0x2c   :  { %1456 = vmatpush3.bf16.msra.mxu1 %v1631_v11  ;;  %v1621_v14 = vld [vmem:[#allocation3 + $0x7c] ss:$12 sps:$4 sm:$0xff]   ;;  %v1633_v16 = vld [vmem:[#allocation3 + $0x38] ss:$12 sps:$4 sm:$0xff]   ;;  %v1624_v17 = vld [vmem:[#allocation3 + $0x94] ss:$12 sps:$4 sm:$0xff]  }
  0x2d   :  { %1457 = vmatprep.subr.bf16.mxu1 %v1758_v1  ;;  %v1634_v18 = vld [vmem:[#allocation3 + $0x50] ss:$12 sps:$4 sm:$0xff]   ;;  %v1627_v20 = vld [vmem:[#allocation3 + $0xac] ss:$12 sps:$4 sm:$0xff]   ;;  %v1635_v21 = vld [vmem:[#allocation3 + $0x68] ss:$12 sps:$4 sm:$0xff]  }
  0x2e   :  { %218 = vmatpush1.bf16.msra.mxu0 %v1611_v5  ;;  %v1626_v19 = vld [vmem:[#allocation3 + $0x90] ss:$12 sps:$4 sm:$0xff]   ;;  %v1629_v22 = vld [vmem:[#allocation3 + $0xa8] ss:$12 sps:$4 sm:$0xff]   ;;  %v1636_v24 = vld [vmem:[#allocation3 + $0x80] ss:$12 sps:$4 sm:$0xff]  }
  0x2f   :  { %219 = vmatprep.subr.bf16.mxu0 %v1612_v6  ;;  %v1630_v23 = vld [vmem:[%s2030_s0] sm:$0xff]   ;;  %v1637_v25 = vld [vmem:[#allocation3 + $0x98] ss:$12 sps:$4 sm:$0xff]   ;;  %v1638_v26 = vld [vmem:[#allocation3 + $0xb0] ss:$12 sps:$4 sm:$0xff]   ;;  %vm1759_vm0 = vmmov 0  }
  0x30   :  { %1458 = vmatpush3.bf16.msra.mxu1 %v1632_v12  ;;  %1471 = vmatprep.mubr.msk.bf16.mxu1 %vm1759_vm0, %v1758_v1  ;;  %vm308_vm1 = vcmask 261120   ;;  %s1760_s0 = smov 96   ;;  %s1761_s17 = smov 32   ;;  %vm371_vm2 = vcmask 1043456   ;;  %v303_v43 = vshrl.u32 %v302_v42, 7  ;;  %v305_v44 = vand.u32 127, %v302_v42 }
  0x31   :  { %1459 = vmatprep.subr.bf16.mxu1 %v1758_v1  ;;  %v1762_v45 = vmov -1e+30   ;;  %vm355_vm4 = vcmask 64512   ;;  %vm533_vm5 = vcmask 523520   ;;  %vm649_vm6 = vcmask 785920   ;;  %s1763_s20 = smov [#allocation8]  }
  0x32   :  { %220 = vmatpush1.bf16.msra.mxu0 %v1614_v7  ;;  %vm306_vm3 = vcmp.le.s32.totalorder %v305_v44, %v303_v43  ;;  %vm765_vm7 = vcmask 1048320   ;;  %s1342_s21 = sshll.u32 %s1763_s20, 4  ;;  %s1343_s21 = int_to_ptr.vmem [resolvable:$true] %s1342_s21 }
  0x33   :  { %221 = vmatprep.subr.bf16.mxu0 %v1615_v8  ;;  %v1863_v46 = vsel %vm306_vm3, 0.0, %v1762_v45  ;;  %s1723_s22 = scalar_lea.vmem %s1343_s21, 256  ;;  %p1728_p3 = scmp.lt.s32.totalorder %s1343_s21, %s1343_s21 }
  0x34   :  { %1460 = vmatpush3.bf16.msra.mxu1 %v1633_v16  ;;  %p1724_p2 = scmp.ne.s32.totalorder %s1343_s21, %s1723_s22  ;;  %p1729_p4 = scmp.lt.s32.totalorder %s1723_s22, %s1723_s22 }
  0x35   :  { %1461 = vmatprep.subr.bf16.mxu1 %v1758_v1 }
  0x36   :  { %222 = vmatpush1.bf16.msra.mxu0 %v1617_v9  ;;  %p1730_p5 = por %p1729_p4, %p1728_p3 }
  0x37   :  { %223 = vmatprep.subr.bf16.mxu0 %v1618_v10 }
  0x38   :  { %1462 = vmatpush3.bf16.msra.mxu1 %v1634_v18  ;;  %p1731_p6 = pnand %p1730_p5, %p1724_p2 }
  0x39   :  { %1463 = vmatprep.subr.bf16.mxu1 %v1758_v1 }
  0x3a   :  { %224 = vmatpush1.bf16.msra.mxu0 %v1620_v13 }
  0x3b   :  { %225 = vmatprep.subr.bf16.mxu0 %v1621_v14 }
  0x3c   :  { %1464 = vmatpush3.bf16.msra.mxu1 %v1635_v21 }
  0x3d   :  { %1465 = vmatprep.subr.bf16.mxu1 %v1758_v1 }
  0x3e   :  { %226 = vmatpush1.bf16.msra.mxu0 %v1623_v15 }
  0x3f   :  { %227 = vmatprep.subr.bf16.mxu0 %v1624_v17 }
  0x40   :  { %1466 = vmatpush3.bf16.msra.mxu1 %v1636_v24 }
  0x41   :  { %1467 = vmatprep.subr.bf16.mxu1 %v1758_v1 }
  0x42   :  { %228 = vmatpush1.bf16.msra.mxu0 %v1626_v19 }
  0x43   :  { %229 = vmatprep.subr.bf16.mxu0 %v1627_v20 }
  0x44   :  { %1468 = vmatpush3.bf16.msra.mxu1 %v1637_v25 }
  0x45   :  { %1469 = vmatprep.subr.bf16.mxu1 %v1758_v1 }
  0x46   :  { %230 = vmatpush1.bf16.msra.mxu0 %v1629_v22 }
  0x47   :  { %1499 = vmatprep.subr.bf16.mxu0 %v1758_v1 }
  0x48   :  { %1470 = vmatpush3.bf16.msra.mxu1 %v1638_v26 }
  0x49   :  { %248 = vmatmul.mubr.bf16.vlgmr.msra.gmra.mrb[0].mxu0 %v1630_v23  ;;  %1475 = vmatprep.subr.bf16.mxu1 %v1758_v1 }
  0x4a   :  { %1501 = vmatprep.mubr.msk.bf16.mxu0 %vm1759_vm0, %v1758_v1 }
  0x4b   :  { %1472 = vmatmul.mubr.bf16.vlgmr.msra.gmra.mrb[0].mxu1 %v1630_v23 }
  0x4c   :  { %1477 = vmatprep.mubr.msk.bf16.mxu1 %vm1759_vm0, %v1758_v1 }
 0x11c   :  { %v249_v27 = vpop.f32.mrb[0].mxu0 }
 0x11d   :  { %v251_v28 = vpop.f32.mrb[1].mxu0 }
 0x11e   :  { %v253_v29 = vpop.f32.mrb[2].mxu0  ;;  %v292_v36 = vpop.f32.mrb[0].mxu1 }
 0x11f   :  { %v299_v30 = vpack.c.bf16 %v253_v29, %v249_v27  ;;  %v255_v31 = vpop.f32.mrb[3].mxu0  ;;  %v1473_v37 = vpop.f32.mrb[1].mxu1 }
 0x120   :  { %v300_v32 = vpack.c.bf16 %v255_v31, %v251_v28  ;;  %v295_v38 = vpop.f32.mrb[2].mxu1 }
 0x121   :  { %v1850_v35 = vrot.slane %v299_v30, 4  ;;  %v1858_v39 = vpack.c.bf16 %v295_v38, %v292_v36  ;;  %v1474_v40 = vpop.f32.mrb[3].mxu1 }
 0x122   :  { %420 = vrot.lane.b32.xlu1 %v300_v32, %s1760_s0  ;;  %v313_v33 = vsel %vm308_vm1, %v300_v32, 0  ;;  %v1846_v34 = vrot.slane %v300_v32, 4 }
 0x123   :  { %1476 = vmatpush3.bf16.xpose.msra.mxu1 %v313_v33  ;;  %v373_v41 = vsel %vm371_vm2, %v1858_v39, 0 }
 0x124   :  { %1481 = vmatprep.subr.bf16.mxu1 %v1758_v1  ;;  %v773_v8 = vsel %vm308_vm1, %v1846_v34, 0 }
 0x126   :  { %417 = vrot.lane.b32.xlu1 %v299_v30, %s1760_s0 }
 0x12a   :  { %535 = vrot.lane.b32.xlu1 %v299_v30, %s1755_s1  ;;  %1478 = vmatmul.mubr.msk.bf16.vlgmr.msra.gmra.mrb[4].mxu1 %vm308_vm1, %v299_v30 }
 0x12b   :  { %1483 = vmatprep.mubr.msk.bf16.mxu1 %vm1759_vm0, %v1758_v1  ;;  %1482 = vmatpush3.bf16.msra.mxu1 %v373_v41 }
 0x12c   :  { %1487 = vmatprep.subr.bf16.mxu1 %v1758_v1 }
 0x12e   :  { %653 = vrot.lane.b32.xlu1 %v300_v32, %s1761_s17 }
 0x132   :  { %651 = vrot.lane.b32.xlu1 %v299_v30, %s1761_s17 }
 0x136   :  { %877 = vrot.lane.b32.xlu1 %v1846_v34, %s1760_s0 }
 0x13a   :  { %875 = vrot.lane.b32.xlu1 %v1850_v35, %s1760_s0 }
 0x13e   :  { %992 = vrot.lane.b32.xlu1 %v1846_v34, %s1755_s1 }
 0x142   :  { %1107 = vrot.lane.b32.xlu1 %v1846_v34, %s1761_s17 }
 0x194   :  { %v421_v58 = vpop.permute.xlu1 %420 }
 0x195   :  { %v426_v6 = vsel %vm308_vm1, %v421_v58, 0 }
 0x198   :  { %v418_v59 = vpop.permute.xlu1 %417 }
 0x19c   :  { %v536_v61 = vpop.permute.xlu1 %535 }
 0x1a0   :  { %v654_v0 = vpop.permute.xlu1 %653 }
 0x1a1   :  { %v659_v4 = vsel %vm308_vm1, %v654_v0, 0 }
 0x1a4   :  { %v652_v7 = vpop.permute.xlu1 %651 }
 0x1a8   :  { %v878_v9 = vpop.permute.xlu1 %877 }
 0x1a9   :  { %v883_v11 = vsel %vm308_vm1, %v878_v9, 0 }
 0x1ac   :  { %v876_v10 = vpop.permute.xlu1 %875 }
 0x1b0   :  { %v993_v12 = vpop.permute.xlu1 %992 }
 0x1b1   :  { %v998_v13 = vsel %vm308_vm1, %v993_v12, 0 }
 0x1b4   :  { %v1108_v14 = vpop.permute.xlu1 %1107 }
 0x1b5   :  { %v1113_v16 = vsel %vm308_vm1, %v1108_v14, 0 }
 0x1fd   :  { %v349_v47 = vpop.f32.mrb[4].mxu1 }
 0x1fe   :  { %v350_v48 = vadd.f32 %v349_v47, %v1863_v46  ;;  %v1479_v49 = vpop.f32.mrb[5].mxu1 }
 0x1ff   :  { %v352_v50 = vpop.f32.mrb[6].mxu1 }
 0x200   :  { %v1480_v51 = vpop.f32.mrb[7].mxu1  ;;  %v356_v52 = vsel %vm355_vm4, %v350_v48, -inf }
 0x201   :  { %357 = vmax.xlane.f32.xlu0 %v356_v52 }
 0x28e   :  { %v358_v53 = vpop.xlane.xlu0 %357 }
 0x28f   :  { %v359_v54 = vsub.f32 %v350_v48, %v358_v53 }
 0x291   :  { %v360_v55 = vmul.f32 1.442695, %v359_v54 }
 0x293   :  { %1647 = vpow2.f32 %v360_v55 }
 0x29d   :  { %v1648_v56 = vpop.eup %1647 }
 0x29e   :  { %v362_v57 = vsel %vm355_vm4, %v1648_v56, 0.0 }
 0x29f   :  { %363 = vadd.xlane.f32.xlu0 %v362_v57 }
 0x2b5   :  { %537 = vrot.lane.b32.xlu0 %v300_v32, %s1755_s1 }
 0x2b9   :  { %990 = vrot.lane.b32.xlu0 %v1850_v35, %s1755_s1 }
 0x2bd   :  { %1105 = vrot.lane.b32.xlu0 %v1850_v35, %s1761_s17 }
 0x32c   :  { %v364_v60 = vpop.xlane.xlu0 %363 }
 0x32d   :  { %1649 = vrcp.f32 %v364_v60 }
 0x330   :  { %v538_v62 = vpop.permute.xlu0 %537 }
 0x331   :  { %v543_v63 = vsel %vm308_vm1, %v538_v62, 0 }
 0x332   :  { %1500 = vmatpush3.bf16.xpose.msra.mxu0 %v543_v63 }
 0x333   :  { %1511 = vmatprep.subr.bf16.mxu0 %v1758_v1 }
 0x334   :  { %v991_v15 = vpop.permute.xlu0 %990 }
 0x337   :  { %v1650_v2 = vpop.eup %1649 }
 0x338   :  { %v366_v3 = vmul.f32 %v1650_v2, %v1648_v56  ;;  %v1106_v17 = vpop.permute.xlu0 %1105 }
 0x339   :  { %1502 = vmatmul.mubr.msk.bf16.vlgmr.msra.gmra.mrb[4].mxu0 %vm308_vm1, %v536_v61 }
 0x33a   :  { %1512 = vmatpush3.bf16.xpose.msra.mxu0 %v659_v4  ;;  %v367_v5 = vpack.c.bf16 %v366_v3, %v366_v3  ;;  %1513 = vmatprep.mubr.msk.bf16.mxu0 %vm1759_vm0, %v1758_v1 }
 0x33b   :  { %1523 = vmatprep.subr.bf16.mxu0 %v1758_v1 }
 0x33c   :  { %1484 = vmatmul.mubr.msk.bf16.vlgmr.msra.gmra.mrb[8].mxu1 %vm355_vm4, %v367_v5 }
 0x33d   :  { %1488 = vmatpush3.bf16.xpose.msra.mxu1 %v426_v6  ;;  %1489 = vmatprep.mubr.msk.bf16.mxu1 %vm1759_vm0, %v1758_v1 }
 0x33e   :  { %1493 = vmatprep.subr.bf16.mxu1 %v1758_v1 }
 0x341   :  { %1514 = vmatmul.mubr.msk.bf16.vlgmr.msra.gmra.mrb[8].mxu0 %vm308_vm1, %v652_v7 }
 0x342   :  { %1524 = vmatpush3.bf16.xpose.msra.mxu0 %v773_v8  ;;  %1525 = vmatprep.mubr.msk.bf16.mxu0 %vm1759_vm0, %v1758_v1 }
 0x343   :  { %1535 = vmatprep.subr.bf16.mxu0 %v1758_v1 }
 0x344   :  { %1490 = vmatmul.mubr.msk.bf16.vlgmr.msra.gmra.mrb[12].mxu1 %vm308_vm1, %v418_v59 }
 0x345   :  { %1495 = vmatprep.mubr.msk.bf16.mxu1 %vm1759_vm0, %v1758_v1 }
 0x349   :  { %1526 = vmatmul.mubr.msk.bf16.vlgmr.msra.gmra.mrb[12].mxu0 %vm308_vm1, %v1850_v35 }
 0x34a   :  { %1536 = vmatpush3.bf16.xpose.msra.mxu0 %v883_v11  ;;  %1537 = vmatprep.mubr.msk.bf16.mxu0 %vm1759_vm0, %v1758_v1 }
 0x34b   :  { %1547 = vmatprep.subr.bf16.mxu0 %v1758_v1 }
 0x351   :  { %1538 = vmatmul.mubr.msk.bf16.vlgmr.msra.gmra.mrb[16].mxu0 %vm308_vm1, %v876_v10 }
 0x352   :  { %1548 = vmatpush3.bf16.xpose.msra.mxu0 %v998_v13  ;;  %1549 = vmatprep.mubr.msk.bf16.mxu0 %vm1759_vm0, %v1758_v1 }
 0x353   :  { %1559 = vmatprep.subr.bf16.mxu0 %v1758_v1 }
 0x359   :  { %1550 = vmatmul.mubr.msk.bf16.vlgmr.msra.gmra.mrb[20].mxu0 %vm308_vm1, %v991_v15 }
 0x35a   :  { %1560 = vmatpush3.bf16.xpose.msra.mxu0 %v1113_v16  ;;  %1561 = vmatprep.mubr.msk.bf16.mxu0 %vm1759_vm0, %v1758_v1 }
 0x35b   :  { %1571 = vmatprep.subr.bf16.mxu0 %v1758_v1 }
 0x361   :  { %1562 = vmatmul.mubr.msk.bf16.vlgmr.msra.gmra.mrb[24].mxu0 %vm308_vm1, %v1106_v17 }
 0x362   :  { %1587 = vmatprep.mubr.msk.bf16.mxu0 %vm1759_vm0, %v1758_v1 }
 0x40c   :  { %v579_v18 = vpop.f32.mrb[4].mxu0 }
 0x40d   :  { %v580_v19 = vadd.f32 %v579_v18, %v1863_v46  ;;  %v1503_v20 = vpop.f32.mrb[5].mxu0 }
 0x40e   :  { %v582_v21 = vpop.f32.mrb[6].mxu0 }
 0x40f   :  { %v409_v22 = vpop.f32.mrb[8].mxu1  ;;  %v1504_v23 = vpop.f32.mrb[7].mxu0  ;;  %v585_v24 = vsel %vm355_vm4, %v580_v19, -inf }
 0x410   :  { %415 = vst.msk [vmem:[#allocation2] sm:$0xff] %vm308_vm1, %v409_v22  ;;  %586 = vmax.xlane.f32.xlu0 %v585_v24  ;;  %v1485_v25 = vpop.f32.mrb[9].mxu1 }
 0x411   :  { %v412_v26 = vpop.f32.mrb[10].mxu1 }
 0x412   :  { %v1486_v27 = vpop.f32.mrb[11].mxu1 }
 0x414   :  { %v695_v28 = vpop.f32.mrb[8].mxu0 }
 0x415   :  { %v696_v29 = vadd.f32 %v695_v28, %v1863_v46  ;;  %v1515_v30 = vpop.f32.mrb[9].mxu0 }
 0x416   :  { %v698_v31 = vpop.f32.mrb[10].mxu0 }
 0x417   :  { %v462_v32 = vpop.f32.mrb[12].mxu1  ;;  %v1516_v33 = vpop.f32.mrb[11].mxu0  ;;  %v701_v34 = vsel %vm355_vm4, %v696_v29, -inf }
 0x418   :  { %v463_v35 = vadd.f32 %v462_v32, %v1863_v46  ;;  %702 = vmax.xlane.f32.xlu0 %v701_v34  ;;  %v1491_v36 = vpop.f32.mrb[13].mxu1 }
 0x419   :  { %v465_v37 = vpop.f32.mrb[14].mxu1 }
 0x41a   :  { %v1492_v38 = vpop.f32.mrb[15].mxu1  ;;  %v468_v40 = vsel %vm355_vm4, %v463_v35, -inf  ;;  %v827_v37 = vrot.slane %v1858_v39, 4 }
 0x41b   :  { %469 = vmax.xlane.f32.xlu1 %v468_v40 }
 0x41c   :  { %v809_v41 = vpop.f32.mrb[12].mxu0 }
 0x41d   :  { %v810_v42 = vadd.f32 %v809_v41, %v1863_v46  ;;  %v1527_v43 = vpop.f32.mrb[13].mxu0 }
 0x41e   :  { %v812_v44 = vpop.f32.mrb[14].mxu0 }
 0x41f   :  { %v1528_v45 = vpop.f32.mrb[15].mxu0  ;;  %v815_v47 = vsel %vm355_vm4, %v810_v42, -inf }
 0x420   :  { %816 = vmax.xlane.f32.xlu1 %v815_v47 }
 0x424   :  { %v919_v48 = vpop.f32.mrb[16].mxu0 }
 0x425   :  { %v920_v49 = vadd.f32 %v919_v48, %v1863_v46  ;;  %v1539_v50 = vpop.f32.mrb[17].mxu0 }
 0x426   :  { %v922_v51 = vpop.f32.mrb[18].mxu0 }
 0x427   :  { %v1540_v52 = vpop.f32.mrb[19].mxu0  ;;  %v925_v53 = vsel %vm355_vm4, %v920_v49, -inf }
 0x428   :  { %926 = vmax.xlane.f32.xlu0 %v925_v53 }
 0x42c   :  { %v1034_v54 = vpop.f32.mrb[20].mxu0 }
 0x42d   :  { %v1035_v55 = vadd.f32 %v1034_v54, %v1863_v46  ;;  %v1551_v56 = vpop.f32.mrb[21].mxu0 }
 0x42e   :  { %v1037_v57 = vpop.f32.mrb[22].mxu0 }
 0x42f   :  { %v1552_v58 = vpop.f32.mrb[23].mxu0  ;;  %v1040_v59 = vsel %vm355_vm4, %v1035_v55, -inf }
 0x430   :  { %1041 = vmax.xlane.f32.xlu1 %v1040_v59 }
 0x434   :  { %v1149_v60 = vpop.f32.mrb[24].mxu0 }
 0x435   :  { %v1150_v61 = vadd.f32 %v1149_v60, %v1863_v46  ;;  %v1563_v62 = vpop.f32.mrb[25].mxu0  ;;  %v832_v60 = vsel %vm371_vm2, %v827_v37, 0 }
 0x436   :  { %v1152_v63 = vpop.f32.mrb[26].mxu0 }
 0x437   :  { %v1564_v0 = vpop.f32.mrb[27].mxu0  ;;  %v1155_v2 = vsel %vm355_vm4, %v1150_v61, -inf }
 0x438   :  { %1156 = vmax.xlane.f32.xlu0 %v1155_v2 }
 0x49d   :  { %v587_v3 = vpop.xlane.xlu0 %586 }
 0x49e   :  { %v588_v4 = vsub.f32 %v580_v19, %v587_v3 }
 0x4a0   :  { %v589_v5 = vmul.f32 1.442695, %v588_v4 }
 0x4a2   :  { %1651 = vpow2.f32 %v589_v5 }
 0x4a5   :  { %v703_v6 = vpop.xlane.xlu0 %702 }
 0x4a6   :  { %v704_v7 = vsub.f32 %v696_v29, %v703_v6 }
 0x4a8   :  { %v705_v8 = vmul.f32 1.442695, %v704_v7  ;;  %v470_v9 = vpop.xlane.xlu1 %469 }
 0x4a9   :  { %v471_v10 = vsub.f32 %v463_v35, %v470_v9 }
 0x4aa   :  { %1653 = vpow2.f32 %v705_v8 }
 0x4ab   :  { %v472_v11 = vmul.f32 1.442695, %v471_v10 }
 0x4ac   :  { %v1928_v12 = vpop.eup %1651 }
 0x4ad   :  { %1655 = vpow2.f32 %v472_v11  ;;  %v817_v46 = vpop.xlane.xlu1 %816  ;;  %v591_v13 = vsel %vm355_vm4, %v1928_v12, 0.0 }
 0x4ae   :  { %v818_v14 = vsub.f32 %v810_v42, %v817_v46  ;;  %592 = vadd.xlane.f32.xlu0 %v591_v13 }
 0x4b0   :  { %v819_v15 = vmul.f32 1.442695, %v818_v14 }
 0x4b2   :  { %1657 = vpow2.f32 %v819_v15 }
 0x4b4   :  { %v1932_v16 = vpop.eup %1653 }
 0x4b5   :  { %v927_v17 = vpop.xlane.xlu0 %926  ;;  %v707_v18 = vsel %vm355_vm4, %v1932_v16, 0.0 }
 0x4b6   :  { %v928_v19 = vsub.f32 %v920_v49, %v927_v17  ;;  %708 = vadd.xlane.f32.xlu1 %v707_v18 }
 0x4b7   :  { %v1656_v20 = vpop.eup %1655 }
 0x4b8   :  { %v929_v21 = vmul.f32 1.442695, %v928_v19  ;;  %v474_v22 = vsel %vm355_vm4, %v1656_v20, 0.0 }
 0x4ba   :  { %1659 = vpow2.f32 %v929_v21  ;;  %475 = vadd.xlane.f32.xlu1 %v474_v22 }
 0x4bc   :  { %v1937_v23 = vpop.eup %1657 }
 0x4bd   :  { %v821_v24 = vsel %vm355_vm4, %v1937_v23, 0.0  ;;  %v1042_v27 = vpop.xlane.xlu1 %1041 }
 0x4be   :  { %822 = vadd.xlane.f32.xlu0 %v821_v24  ;;  %v1043_v28 = vsub.f32 %v1035_v55, %v1042_v27 }
 0x4c0   :  { %v1044_v29 = vmul.f32 1.442695, %v1043_v28 }
 0x4c2   :  { %1661 = vpow2.f32 %v1044_v29 }
 0x4c4   :  { %v1941_v25 = vpop.eup %1659 }
 0x4c5   :  { %v931_v26 = vsel %vm355_vm4, %v1941_v25, 0.0  ;;  %v1157_v30 = vpop.xlane.xlu0 %1156 }
 0x4c6   :  { %932 = vadd.xlane.f32.xlu0 %v931_v26  ;;  %v1158_v31 = vsub.f32 %v1150_v61, %v1157_v30 }
 0x4c8   :  { %v1159_v33 = vmul.f32 1.442695, %v1158_v31 }
 0x4ca   :  { %1663 = vpow2.f32 %v1159_v33  ;;  %v1640_v33 = vld [vmem:[#allocation6 + $0x8] sm:$0xff]  }
 0x4cb   :  { %481 = vrot.lane.b32.xlu1 %v1858_v39, %s1760_s0 }
 0x4cc   :  { %v1951_v32 = vpop.eup %1661 }
 0x4cd   :  { %v1046_v34 = vsel %vm355_vm4, %v1951_v32, 0.0 }
 0x4d4   :  { %v1955_v35 = vpop.eup %1663 }
 0x4d5   :  { %v1161_v36 = vsel %vm355_vm4, %v1955_v35, 0.0 }
 0x4dc   :  { %597 = vrot.lane.b32.xlu0 %v1858_v39, %s1755_s1 }
 0x4e0   :  { %713 = vrot.lane.b32.xlu0 %v1858_v39, %s1761_s17 }
 0x4ef   :  { %1047 = vadd.xlane.f32.xlu1 %v1046_v34  ;;  %v1641_v34 = vld [vmem:[#allocation6 + $0x10] sm:$0xff]  }
 0x4ff   :  { %1162 = vadd.xlane.f32.xlu0 %v1161_v36 }
 0x500   :  { %937 = vrot.lane.b32.xlu1 %v827_v37, %s1760_s0 }
 0x504   :  { %1167 = vrot.lane.b32.xlu1 %v827_v37, %s1761_s17 }
 0x515   :  { %1052 = vrot.lane.b32.xlu0 %v827_v37, %s1755_s1 }
 0x53b   :  { %v593_v41 = vpop.xlane.xlu0 %592 }
 0x543   :  { %v709_v38 = vpop.xlane.xlu1 %708 }
 0x547   :  { %v476_v40 = vpop.xlane.xlu1 %475 }
 0x548   :  { %1665 = vrcp.f32 %v476_v40 }
 0x549   :  { %1667 = vrcp.f32 %v593_v41  ;;  %v1643_v41 = vld [vmem:[#allocation6 + $0x20] sm:$0xff]  }
 0x54a   :  { %1669 = vrcp.f32 %v709_v38 }
 0x54b   :  { %v482_v42 = vpop.permute.xlu1 %481  ;;  %v823_v44 = vpop.xlane.xlu0 %822 }
 0x54c   :  { %v487_v43 = vsel %vm371_vm2, %v482_v42, 0  ;;  %1671 = vrcp.f32 %v823_v44  ;;  %v1644_v42 = vld [vmem:[#allocation6 + $0x28] sm:$0xff]   ;;  %v1646_v44 = vld [vmem:[#allocation6 + $0x38] sm:$0xff]  }
 0x54d   :  { %1494 = vmatpush3.bf16.msra.mxu1 %v487_v43  ;;  %v1645_v43 = vld [vmem:[#allocation6 + $0x30] sm:$0xff]  }
 0x54e   :  { %1505 = vmatprep.subr.bf16.mxu1 %v1758_v1 }
 0x552   :  { %v1666_v39 = vpop.eup %1665 }
 0x553   :  { %v478_v45 = vmul.f32 %v1666_v39, %v1656_v20  ;;  %v933_v47 = vpop.xlane.xlu0 %932  ;;  %v1668_v49 = vpop.eup %1667 }
 0x554   :  { %v595_v52 = vmul.f32 %v1668_v49, %v1928_v12  ;;  %v1670_v55 = vpop.eup %1669  ;;  %1673 = vrcp.f32 %v933_v47 }
 0x555   :  { %v479_v48 = vpack.c.bf16 %v478_v45, %v478_v45  ;;  %v711_v57 = vmul.f32 %v1670_v55, %v1932_v16 }
 0x556   :  { %v596_v54 = vpack.c.bf16 %v595_v52, %v595_v52  ;;  %v1672_v59 = vpop.eup %1671 }
 0x557   :  { %v598_v50 = vpop.permute.xlu0 %597  ;;  %1496 = vmatmul.mubr.msk.bf16.vlgmr.msra.gmra.mrb[16].mxu1 %vm355_vm4, %v479_v48  ;;  %v712_v58 = vpack.c.bf16 %v711_v57, %v711_v57  ;;  %v825_v61 = vmul.f32 %v1672_v59, %v1937_v23 }
 0x558   :  { %v603_v51 = vsel %vm371_vm2, %v598_v50, 0  ;;  %1507 = vmatprep.mubr.msk.bf16.mxu1 %vm1759_vm0, %v1758_v1 }
 0x559   :  { %1506 = vmatpush3.bf16.msra.mxu1 %v603_v51  ;;  %v826_v62 = vpack.c.bf16 %v825_v61, %v825_v61  ;;  %v1396_v61 = vld [vmem:[%s2033_s3] ss:$0 sm:$0xff] }
 0x55a   :  { %1517 = vmatprep.subr.bf16.mxu1 %v1758_v1 }
 0x55b   :  { %v714_v53 = vpop.permute.xlu0 %713 }
 0x55c   :  { %v719_v56 = vsel %vm371_vm2, %v714_v53, 0 }
 0x55e   :  { %v1674_v63 = vpop.eup %1673 }
 0x55f   :  { %1508 = vmatmul.mubr.msk.bf16.vlgmr.msra.gmra.mrb[20].mxu1 %vm355_vm4, %v596_v54  ;;  %v935_v2 = vmul.f32 %v1674_v63, %v1941_v25 }
 0x560   :  { %1518 = vmatpush3.bf16.msra.mxu1 %v719_v56  ;;  %1519 = vmatprep.mubr.msk.bf16.mxu1 %vm1759_vm0, %v1758_v1 }
 0x561   :  { %1529 = vmatprep.subr.bf16.mxu1 %v1758_v1  ;;  %v936_v5 = vpack.c.bf16 %v935_v2, %v935_v2 }
 0x567   :  { %1520 = vmatmul.mubr.msk.bf16.vlgmr.msra.gmra.mrb[24].mxu1 %vm355_vm4, %v712_v58 }
 0x568   :  { %1530 = vmatpush3.bf16.msra.mxu1 %v832_v60  ;;  %1531 = vmatprep.mubr.msk.bf16.mxu1 %vm1759_vm0, %v1758_v1 }
 0x569   :  { %1541 = vmatprep.subr.bf16.mxu1 %v1758_v1 }
 0x56f   :  { %1532 = vmatmul.mubr.msk.bf16.vlgmr.msra.gmra.mrb[28].mxu1 %vm355_vm4, %v826_v62 }
 0x570   :  { %1543 = vmatprep.mubr.msk.bf16.mxu1 %vm1759_vm0, %v1758_v1 }
 0x57c   :  { %v1048_v0 = vpop.xlane.xlu1 %1047 }
 0x57d   :  { %1675 = vrcp.f32 %v1048_v0 }
 0x580   :  { %v938_v3 = vpop.permute.xlu1 %937 }
 0x581   :  { %v943_v4 = vsel %vm371_vm2, %v938_v3, 0 }
 0x582   :  { %1542 = vmatpush3.bf16.msra.mxu1 %v943_v4 }
 0x583   :  { %1553 = vmatprep.subr.bf16.mxu1 %v1758_v1 }
 0x584   :  { %v1168_v11 = vpop.permute.xlu1 %1167 }
 0x585   :  { %1544 = vmatmul.mubr.msk.bf16.vlgmr.msra.gmra.mrb[32].mxu1 %vm355_vm4, %v936_v5  ;;  %v1173_v46 = vsel %vm371_vm2, %v1168_v11, 0 }
 0x586   :  { %1555 = vmatprep.mubr.msk.bf16.mxu1 %vm1759_vm0, %v1758_v1 }
 0x587   :  { %v1676_v6 = vpop.eup %1675 }
 0x588   :  { %v1050_v8 = vmul.f32 %v1676_v6, %v1951_v32  ;;  %v1639_v32 = vld [vmem:[#allocation6] sm:$0xff]  }
 0x589   :  { %1572 = vmatpush3.bf16.msra.mxu0 %v1639_v32 }
 0x58a   :  { %v1051_v12 = vpack.c.bf16 %v1050_v8, %v1050_v8  ;;  %1573 = vmatprep.subr.bf16.mxu0 %v1758_v1 }
 0x58c   :  { %v1163_v7 = vpop.xlane.xlu0 %1162 }
 0x58d   :  { %1677 = vrcp.f32 %v1163_v7  ;;  %1574 = vmatpush3.bf16.msra.mxu0 %v1640_v33 }
 0x58e   :  { %1575 = vmatprep.subr.bf16.mxu0 %v1758_v1 }
 0x590   :  { %v1053_v9 = vpop.permute.xlu0 %1052 }
 0x591   :  { %v1058_v10 = vsel %vm371_vm2, %v1053_v9, 0  ;;  %1576 = vmatpush3.bf16.msra.mxu0 %v1641_v34 }
 0x592   :  { %1554 = vmatpush3.bf16.msra.mxu1 %v1058_v10  ;;  %1577 = vmatprep.subr.bf16.mxu0 %v1758_v1 }
 0x593   :  { %1565 = vmatprep.subr.bf16.mxu1 %v1758_v1 }
 0x595   :  { %1556 = vmatmul.mubr.msk.bf16.vlgmr.msra.gmra.mrb[36].mxu1 %vm355_vm4, %v1051_v12 }
 0x596   :  { %1566 = vmatpush3.bf16.msra.mxu1 %v1173_v46  ;;  %1567 = vmatprep.mubr.msk.bf16.mxu1 %vm1759_vm0, %v1758_v1 }
 0x597   :  { %v1678_v13 = vpop.eup %1677 }
 0x598   :  { %v1165_v14 = vmul.f32 %v1678_v13, %v1955_v35  ;;  %v1642_v35 = vld [vmem:[#allocation6 + $0x18] sm:$0xff]  }
 0x599   :  { %1578 = vmatpush3.bf16.msra.mxu0 %v1642_v35 }
 0x59a   :  { %v1166_v15 = vpack.c.bf16 %v1165_v14, %v1165_v14  ;;  %1579 = vmatprep.subr.bf16.mxu0 %v1758_v1 }
 0x59d   :  { %1568 = vmatmul.mubr.msk.bf16.vlgmr.msra.gmra.mrb[40].mxu1 %vm355_vm4, %v1166_v15  ;;  %1580 = vmatpush3.bf16.msra.mxu0 %v1643_v41 }
 0x59e   :  { %1581 = vmatprep.subr.bf16.mxu0 %v1758_v1 }
 0x5a1   :  { %1582 = vmatpush3.bf16.msra.mxu0 %v1644_v42 }
 0x5a2   :  { %1583 = vmatprep.subr.bf16.mxu0 %v1758_v1 }
 0x5a5   :  { %1584 = vmatpush3.bf16.msra.mxu0 %v1645_v43 }
 0x5a6   :  { %1585 = vmatprep.subr.bf16.mxu0 %v1758_v1 }
 0x5a9   :  { %1586 = vmatpush3.bf16.msra.mxu0 %v1646_v44 }
 0x62a   :  { %v523_v16 = vpop.f32.mrb[16].mxu1 }
 0x62b   :  { %530 = vrot.lane.b32.xlu1 %v523_v16, %s1761_s17  ;;  %v1497_v17 = vpop.f32.mrb[17].mxu1 }
 0x62c   :  { %v526_v18 = vpop.f32.mrb[18].mxu1 }
 0x62d   :  { %v1498_v19 = vpop.f32.mrb[19].mxu1 }
 0x632   :  { %v639_v20 = vpop.f32.mrb[20].mxu1 }
 0x633   :  { %646 = vrot.lane.b32.xlu1 %v639_v20, %s1755_s1  ;;  %v1509_v21 = vpop.f32.mrb[21].mxu1 }
 0x634   :  { %v642_v22 = vpop.f32.mrb[22].mxu1 }
 0x635   :  { %v1510_v23 = vpop.f32.mrb[23].mxu1 }
 0x63a   :  { %v755_v24 = vpop.f32.mrb[24].mxu1 }
 0x63b   :  { %v1521_v25 = vpop.f32.mrb[25].mxu1 }
 0x63c   :  { %v758_v26 = vpop.f32.mrb[26].mxu1 }
 0x63d   :  { %v1522_v27 = vpop.f32.mrb[27].mxu1 }
 0x642   :  { %v868_v28 = vpop.f32.mrb[28].mxu1 }
 0x643   :  { %874 = vst.msk [vmem:[#allocation2 + $0x8] sm:$0xff] %vm308_vm1, %v868_v28  ;;  %v1533_v29 = vpop.f32.mrb[29].mxu1 }
 0x644   :  { %v871_v30 = vpop.f32.mrb[30].mxu1 }
 0x645   :  { %v1534_v31 = vpop.f32.mrb[31].mxu1 }
 0x658   :  { %v979_v36 = vpop.f32.mrb[32].mxu1 }
 0x659   :  { %986 = vrot.lane.b32.xlu1 %v979_v36, %s1761_s17  ;;  %v1545_v37 = vpop.f32.mrb[33].mxu1 }
 0x65a   :  { %v982_v38 = vpop.f32.mrb[34].mxu1 }
 0x65b   :  { %v1546_v40 = vpop.f32.mrb[35].mxu1 }
 0x65d   :  { %762 = vrot.lane.b32.xlu1 %v755_v24, %s1760_s0 }
 0x668   :  { %v1094_v39 = vpop.f32.mrb[36].mxu1 }
 0x669   :  { %1101 = vrot.lane.b32.xlu0 %v1094_v39, %s1755_s1  ;;  %v1557_v45 = vpop.f32.mrb[37].mxu1 }
 0x66a   :  { %v1097_v47 = vpop.f32.mrb[38].mxu1 }
 0x66b   :  { %v1558_v48 = vpop.f32.mrb[39].mxu1 }
 0x670   :  { %v1209_v49 = vpop.f32.mrb[40].mxu1 }
 0x671   :  { %1216 = vrot.lane.b32.xlu0 %v1209_v49, %s1760_s0  ;;  %v1569_v50 = vpop.f32.mrb[41].mxu1 }
 0x672   :  { %v1212_v51 = vpop.f32.mrb[42].mxu1 }
 0x673   :  { %v1570_v52 = vpop.f32.mrb[43].mxu1 }
 0x69d   :  { %v531_v53 = vpop.permute.xlu1 %530 }
 0x69e   :  { %534 = vst.msk [vmem:[#allocation2] sm:$0xff] %vm533_vm5, %v531_v53 }
 0x6a5   :  { %v647_v54 = vpop.permute.xlu1 %646 }
 0x6a6   :  { %650 = vst.msk [vmem:[#allocation2] sm:$0xff] %vm649_vm6, %v647_v54 }
 0x6cb   :  { %v987_v1 = vpop.permute.xlu1 %986 }
 0x6cc   :  { %989 = vst.msk [vmem:[#allocation2 + $0x8] sm:$0xff] %vm533_vm5, %v987_v1 }
 0x6cf   :  { %v763_v55 = vpop.permute.xlu1 %762 }
 0x6d0   :  { %766 = vst.msk [vmem:[#allocation2] sm:$0xff] %vm765_vm7, %v763_v55 }
 0x6d7   :  { %v1220_v58 = vld [vmem:[#allocation2] sm:$0xff] }
 0x6db   :  { %v1102_v56 = vpop.permute.xlu0 %1101 }
 0x6dc   :  { %1104 = vst.msk [vmem:[#allocation2 + $0x8] sm:$0xff] %vm649_vm6, %v1102_v56 }
 0x6e3   :  { %v1217_v57 = vpop.permute.xlu0 %1216 }
 0x6e4   :  { %1219 = vst.msk [vmem:[#allocation2 + $0x8] sm:$0xff] %vm765_vm7, %v1217_v57 }
 0x6eb   :  { %v1221_v59 = vld [vmem:[#allocation2 + $0x8] sm:$0xff] }
 0x6ec   :  { %v1222_v60 = vpack.c.bf16 %v1221_v59, %v1220_v58 }
 0x6ee   :  { %1588 = vmatmul.mubr.bf16.vlgmr.msra.gmra.mrb[28].mxu0 %v1222_v60 }
 0x7c1   :  { %v1328_v62 = vpop.f32.mrb[28].mxu0 }
 0x7c2   :  { %v1329_v63 = vadd.f32 %v1396_v61, %v1328_v62  ;;  %v1589_v0 = vpop.f32.mrb[29].mxu0 }
 0x7c3   :  { %v1331_v2 = vpop.f32.mrb[30].mxu0 }
 0x7c4   :  { %1335 = vst [vmem:[#allocation8] sm:$0xff] %v1329_v63  ;;  %v1332_v3 = vadd.f32 %v1396_v61, %v1331_v2  ;;  %v1590_v4 = vpop.f32.mrb[31].mxu0 }
 0x7c6   :  { %1336 = vst [vmem:[#allocation8 + $0x8] sm:$0xff] %v1332_v3 }
 0x7c7   :  { %1734 = shalt.err (!%p1731_p6)
}
 0x7c8   :  { %s1735_s24 = scalar_lea.hbm %s2034_s4, 256 }
 0x7c9   :  { %p1736_p7 = scmp.ne.s32.totalorder %s2034_s4, %s1735_s24  ;;  %p1739_p8 = scmp.lt.u32.totalorder %s1735_s24, %s2034_s4 }
 0x7cb   :  { %p1741_p9 = pnand %p1739_p8, %p1736_p7 }
 0x7cd   :  { %1744 = shalt.err (!%p1741_p9)
}
 0x7ce   :  { %s1764_s29 = smov 128   ;;  %s1765_s30 = smov 8  }
 0x7cf   :  { %1348 = dma.vmem_to_hbm [thread:$0]  %s1343_s21, 256, %s2034_s4, [#allocation5], %s1764_s29, %s1764_s29, %s1765_s30  }
 0x7d0   :  { %1749 = dma.done.wait [#allocation5], 256  }
 0x7d1   :  { %1750 = vsyncadd [#allocation5], 4294967040 }
 0x7d2   :  { %1352 = vsyncpa [#allocation4], 1 }
 0x7d3   :  { %1353 = vsyncpa [#allocation7], 1 }
 0x7d4   :  { %1354 = vsyncpa [#allocation5], 1 }

</bundles_post_ra>
